<compile_context>
chip_gen: v6e
topology: v6e:2x2x1
jax: 0.10.0
libtpu: 0.0.40
codegen_flags: <defaults>
</compile_context>

<pallas_src>
import jax
import jax.numpy as jnp
from jax.experimental import pallas as pl
from jax.experimental.pallas import tpu as pltpu


def _round_up(x, m):
    return (x + m - 1) // m * m


def mlp_kernel(x_ref, w1_ref, b1_ref, w2_ref, b2_ref, o_ref):
    # f1: Linear(feature_size -> internal_size), MXU matmul with f32 accumulation.
    h = jnp.dot(x_ref[...], w1_ref[...], preferred_element_type=jnp.float32)
    h = h + b1_ref[...]                 # bias broadcast over batch rows (f32)
    h = jnp.tanh(h)                     # EUP transcendental (f32)
    # f2: Linear(internal_size -> padded output), MXU matmul with f32 accumulation.
    y = jnp.dot(h.astype(w2_ref.dtype), w2_ref[...],
                preferred_element_type=jnp.float32)
    y = y + b2_ref[...]
    o_ref[...] = y.astype(o_ref.dtype)  # lane-dense [TB, O_pad] store


def net_module_forward(x, w1, b1, w2, b2, *, block_batch=1024, matmul_dtype=None):
    """Pallas forward of NetModule: f2(tanh(f1(x))).

    x  : [B, F]
    w1 : [F, H]   (transposed torch weight)
    b1 : [1, H]
    w2 : [H, O]   (transposed torch weight)
    b2 : [1, O]
    matmul_dtype : optional (e.g. jnp.bfloat16) dtype for the MXU inputs;
                   accumulation / bias / tanh stay float32.
    returns [B, O] float32
    """
    B, F = x.shape
    Fw, H = w1.shape
    Hw, O = w2.shape
    assert F == Fw and H == Hw

    # ---- lane-dense output: pad the output dim up to a multiple of 128 ----
    O_pad = _round_up(O, 128)
    if O_pad != O:
        w2 = jnp.pad(w2, ((0, 0), (0, O_pad - O)))
        b2 = jnp.pad(b2, ((0, 0), (0, O_pad - O)))

    # ---- batch tiling: biggest tile (<= block_batch) that is a multiple of 8 ----
    TB = min(_round_up(B, 8), block_batch)
    B_pad = _round_up(B, TB)
    if B_pad != B:
        x = jnp.pad(x, ((0, B_pad - B), (0, 0)))

    # ---- optional MXU-native dtype for the matmul operands ----
    if matmul_dtype is not None:
        x = x.astype(matmul_dtype)
        w1 = w1.astype(matmul_dtype)
        w2 = w2.astype(matmul_dtype)

    grid = (B_pad // TB,)

    cost = pl.CostEstimate(
        flops=2 * B_pad * F * H + 2 * B_pad * H * O_pad,
        transcendentals=B_pad * H,
        bytes_accessed=(x.size * x.dtype.itemsize
                        + w1.size * w1.dtype.itemsize
                        + b1.size * b1.dtype.itemsize
                        + w2.size * w2.dtype.itemsize
                        + b2.size * b2.dtype.itemsize
                        + B_pad * O_pad * 4),
    )

    out = pl.pallas_call(
        mlp_kernel,
        out_shape=jax.ShapeDtypeStruct((B_pad, O_pad), jnp.float32),
        grid=grid,
        in_specs=[
            pl.BlockSpec((TB, F), lambda i: (i, 0)),      # x: tiled over batch
            pl.BlockSpec((F, H), lambda i: (0, 0)),       # w1: resident
            pl.BlockSpec((1, H), lambda i: (0, 0)),       # b1: resident
            pl.BlockSpec((H, O_pad), lambda i: (0, 0)),   # w2: resident (padded)
            pl.BlockSpec((1, O_pad), lambda i: (0, 0)),   # b2: resident (padded)
        ],
        out_specs=pl.BlockSpec((TB, O_pad), lambda i: (i, 0)),
        compiler_params=pltpu.CompilerParams(
            dimension_semantics=("parallel",),            # megacore on v7x
        ),
        cost_estimate=cost,
    )(x, w1, b1, w2, b2)

    return out[:B, :O]


if __name__ == "__main__":
    # Small shapes consistent with the module's forward:
    #   feature_size=32, internal_size=64, internal_size2=16 (output), batch=8
    batch, feature_size, internal_size, internal_size2 = 8, 32, 64, 16

    key = jax.random.PRNGKey(0)
    kx, k1, k2, k3, k4 = jax.random.split(key, 5)

    x = jax.random.normal(kx, (batch, feature_size), dtype=jnp.float32)

    # Deterministic parameter init (PyTorch-Linear-style uniform bound), stored as [in, out].
    bound1 = 1.0 / (feature_size ** 0.5)
    w1 = jax.random.uniform(k1, (feature_size, internal_size), jnp.float32, -bound1, bound1)
    b1 = jax.random.uniform(k2, (1, internal_size), jnp.float32, -bound1, bound1)

    bound2 = 1.0 / (internal_size ** 0.5)
    w2 = jax.random.uniform(k3, (internal_size, internal_size2), jnp.float32, -bound2, bound2)
    b2 = jax.random.uniform(k4, (1, internal_size2), jnp.float32, -bound2, bound2)

    # Pure-JAX reference of the same forward pass.
    ref = jnp.tanh(x @ w1 + b1) @ w2 + b2

    # f32 path: tight tolerance.
    out = net_module_forward(x, w1, b1, w2, b2)
    out = jax.block_until_ready(out)
    assert out.shape == (batch, internal_size2)
    assert jnp.allclose(out, ref, atol=1e-5, rtol=1e-5), "f32 mismatch vs reference"

    # bf16 MXU path (v5e/v6e/v7x native matmul dtype): loose tolerance.
    out_bf16 = net_module_forward(x, w1, b1, w2, b2, matmul_dtype=jnp.bfloat16)
    out_bf16 = jax.block_until_ready(out_bf16)
    assert jnp.allclose(out_bf16, ref, atol=5e-2, rtol=5e-2), "bf16 mismatch vs reference"

    print("KERNEL_OK")
</pallas_src>

<mosaic_0001>
module attributes {stable_mosaic.version = 11 : i64} {
  func.func @mlp_kernel(%arg0: i32, %arg1: memref<8x32xf32, #tpu.memory_space<vmem>>, %arg2: memref<32x64xf32, #tpu.memory_space<vmem>>, %arg3: memref<1x64xf32, #tpu.memory_space<vmem>>, %arg4: memref<64x128xf32, #tpu.memory_space<vmem>>, %arg5: memref<1x128xf32, #tpu.memory_space<vmem>>, %arg6: memref<8x128xf32, #tpu.memory_space<vmem>>) attributes {dimension_semantics = [#tpu.dimension_semantics<parallel>], iteration_bounds = array<i64: 1>, scalar_prefetch = 0 : i64, scratch_operands = 0 : i64, tpu.core_type = #tpu.core_type<tc>, window_params = [{transform_indices = @transform_0, window_bounds = array<i64: 8, 32>}, {pipeline_mode = #tpu.pipeline_mode<synchronous>, transform_indices = @transform_1, window_bounds = array<i64: 32, 64>}, {pipeline_mode = #tpu.pipeline_mode<synchronous>, transform_indices = @transform_2, window_bounds = array<i64: 1, 64>}, {pipeline_mode = #tpu.pipeline_mode<synchronous>, transform_indices = @transform_3, window_bounds = array<i64: 64, 128>}, {pipeline_mode = #tpu.pipeline_mode<synchronous>, transform_indices = @transform_4, window_bounds = array<i64: 1, 128>}, {transform_indices = @transform_5, window_bounds = array<i64: 8, 128>}]} {
    %c0 = arith.constant 0 : index
    %c0_0 = arith.constant 0 : index
    %0 = vector.load %arg1[%c0, %c0_0] : memref<8x32xf32, #tpu.memory_space<vmem>>, vector<8x32xf32>
    %c0_1 = arith.constant 0 : index
    %c0_2 = arith.constant 0 : index
    %1 = vector.load %arg2[%c0_1, %c0_2] : memref<32x64xf32, #tpu.memory_space<vmem>>, vector<32x64xf32>
    %cst = arith.constant dense<0.000000e+00> : vector<8x64xf32>
    %2 = tpu.matmul %0, %1, %cst {dimension_numbers = #tpu.dot_dimension_numbers<[1], [0], [0], [1], [0, 0, 1, 1], [], []>} : vector<8x32xf32>, vector<32x64xf32>, vector<8x64xf32> -> vector<8x64xf32>
    %c0_3 = arith.constant 0 : index
    %c0_4 = arith.constant 0 : index
    %3 = vector.load %arg3[%c0_3, %c0_4] : memref<1x64xf32, #tpu.memory_space<vmem>>, vector<1x64xf32>
    %4 = vector.broadcast %3 : vector<1x64xf32> to vector<8x64xf32>
    %5 = arith.addf %2, %4 : vector<8x64xf32>
    %6 = math.tanh %5 : vector<8x64xf32>
    %c0_5 = arith.constant 0 : index
    %c0_6 = arith.constant 0 : index
    %7 = vector.load %arg4[%c0_5, %c0_6] : memref<64x128xf32, #tpu.memory_space<vmem>>, vector<64x128xf32>
    %cst_7 = arith.constant dense<0.000000e+00> : vector<8x128xf32>
    %8 = tpu.matmul %6, %7, %cst_7 {dimension_numbers = #tpu.dot_dimension_numbers<[1], [0], [0], [1], [0, 0, 1, 1], [], []>} : vector<8x64xf32>, vector<64x128xf32>, vector<8x128xf32> -> vector<8x128xf32>
    %c0_8 = arith.constant 0 : index
    %c0_9 = arith.constant 0 : index
    %9 = vector.load %arg5[%c0_8, %c0_9] : memref<1x128xf32, #tpu.memory_space<vmem>>, vector<1x128xf32>
    %10 = vector.broadcast %9 : vector<1x128xf32> to vector<8x128xf32>
    %11 = arith.addf %8, %10 : vector<8x128xf32>
    %c0_10 = arith.constant 0 : index
    %c0_11 = arith.constant 0 : index
    %12 = vector.load %arg6[%c0_10, %c0_11] : memref<8x128xf32, #tpu.memory_space<vmem>>, vector<8x128xf32>
    tpu.vector_store %arg6[%c0_10, %c0_11], %11 {strides = array<i32>} : memref<8x128xf32, #tpu.memory_space<vmem>>, vector<8x128xf32>,
    return
  }
  func.func @transform_0(%arg0: i32) -> (i32, i32) {
    %c0_i32 = arith.constant 0 : i32
    %c0_i32_0 = arith.constant 0 : i32
    return %arg0, %c0_i32 : i32, i32
  }
  func.func @transform_1(%arg0: i32) -> (i32, i32) {
    %c0_i32 = arith.constant 0 : i32
    %c0_i32_0 = arith.constant 0 : i32
    %c0_i32_1 = arith.constant 0 : i32
    return %c0_i32, %c0_i32_0 : i32, i32
  }
  func.func @transform_2(%arg0: i32) -> (i32, i32) {
    %c0_i32 = arith.constant 0 : i32
    %c0_i32_0 = arith.constant 0 : i32
    %c0_i32_1 = arith.constant 0 : i32
    return %c0_i32, %c0_i32_0 : i32, i32
  }
  func.func @transform_3(%arg0: i32) -> (i32, i32) {
    %c0_i32 = arith.constant 0 : i32
    %c0_i32_0 = arith.constant 0 : i32
    %c0_i32_1 = arith.constant 0 : i32
    return %c0_i32, %c0_i32_0 : i32, i32
  }
  func.func @transform_4(%arg0: i32) -> (i32, i32) {
    %c0_i32 = arith.constant 0 : i32
    %c0_i32_0 = arith.constant 0 : i32
    %c0_i32_1 = arith.constant 0 : i32
    return %c0_i32, %c0_i32_0 : i32, i32
  }
  func.func @transform_5(%arg0: i32) -> (i32, i32) {
    %c0_i32 = arith.constant 0 : i32
    %c0_i32_0 = arith.constant 0 : i32
    return %arg0, %c0_i32 : i32, i32
  }
}

</mosaic_0001>

<bundles_post_ra>
// kernel: tpu_custom_call.1
= control target key start
LH: loop header
LB: loop body
LE: loop exit
PB: predicated region body
PF: predicated region fallthrough
CT: control target
= control target key end

     0   :  { %10 = vsyncpa [#allocation3], 0  ;;  %s453_s0 = inlined_call_operand.hbm [shape: f32[8,32], index: 0, kind: input, shape index: {}]   ;;  %s454_s1 = inlined_call_operand.hbm [shape: f32[32,64], index: 1, kind: input, shape index: {}]   ;;  %s455_s2 = inlined_call_operand.vmem [shape: f32[1,64], index: 2, kind: input, shape index: {}]   ;;  %s456_s3 = inlined_call_operand.hbm [shape: f32[64,128], index: 3, kind: input, shape index: {}]   ;;  %s457_s4 = inlined_call_operand.vmem [shape: f32[1,128], index: 4, kind: input, shape index: {}]   ;;  %s458_s5 = inlined_call_operand.hbm [shape: f32[8,128], index: 5, kind: output, shape index: {}]  }
   0x1   :  { %11 = vsyncpa [#allocation6], 0 }
   0x2   :  { %12 = vsyncpa [#allocation4], 0  ;;  %s397_s18 = smov [#allocation5]  }
   0x3   :  { %s28_s19 = sshll.u32 %s397_s18, 4  ;;  %s29_s19 = int_to_ptr.vmem [resolvable:$true] %s28_s19 }
   0x4   :  { %s319_s20 = scalar_lea.vmem %s29_s19, 512  ;;  %p324_p1 = scmp.lt.s32.totalorder %s29_s19, %s29_s19 }
   0x5   :  { %p320_p0 = scmp.ne.s32.totalorder %s29_s19, %s319_s20  ;;  %p325_p2 = scmp.lt.s32.totalorder %s319_s20, %s319_s20 }
   0x7   :  { %p326_p3 = por %p325_p2, %p324_p1 }
   0x9   :  { %p327_p4 = pnand %p326_p3, %p320_p0 }
   0xb   :  { %330 = shalt.err (!%p327_p4)
}
   0xc   :  { %s398_s21 = smov 128   ;;  %s399_s22 = smov 8  }
   0xd   :  { %34 = dma.hbm_to_vmem [thread:$0]  %s454_s1, 512, %s29_s19, [#allocation6], %s398_s21, %s398_s21, %s399_s22  }
   0xe   :  { %s400_s25 = smov [#allocation2]   ;;  %s401_s27 = smov [#allocation7]  }
   0xf   :  { %s19_s26 = sshll.u32 %s400_s25, 4  ;;  %s42_s28 = sshll.u32 %s401_s27, 4  ;;  %s20_s26 = int_to_ptr.vmem [resolvable:$true] %s19_s26  ;;  %s43_s28 = int_to_ptr.vmem [resolvable:$true] %s42_s28 }
  0x10   :  { %s339_s29 = scalar_lea.vmem %s20_s26, 128  ;;  %p344_p6 = scmp.lt.s32.totalorder %s20_s26, %s20_s26 }
  0x11   :  { %p340_p5 = scmp.ne.s32.totalorder %s20_s26, %s339_s29  ;;  %p345_p7 = scmp.lt.s32.totalorder %s339_s29, %s339_s29 }
  0x13   :  { %p346_p8 = por %p345_p7, %p344_p6 }
  0x15   :  { %p347_p9 = pnand %p346_p8, %p340_p5 }
  0x17   :  { %350 = shalt.err (!%p347_p9)
}
  0x18   :  { %22 = dma.hbm_to_vmem [thread:$0]  %s453_s0, 128, %s20_s26, [#allocation3]  }
  0x19   :  { %s359_s7 = scalar_lea.vmem %s43_s28, 1024  ;;  %p364_p11 = scmp.lt.s32.totalorder %s43_s28, %s43_s28 }
  0x1a   :  { %p360_p10 = scmp.ne.s32.totalorder %s43_s28, %s359_s7  ;;  %p365_p12 = scmp.lt.s32.totalorder %s359_s7, %s359_s7 }
  0x1c   :  { %p366_p13 = por %p365_p12, %p364_p11 }
  0x1e   :  { %p367_p0 = pnand %p366_p13, %p360_p10 }
  0x20   :  { %370 = shalt.err (!%p367_p0)
}
  0x21   :  { %48 = dma.hbm_to_vmem [thread:$0]  %s456_s3, 1024, %s43_s28, [#allocation6], %s398_s21, %s398_s21, %s399_s22  }
  0x22   :  { %391 = dma.done.wait [#allocation3], 128  }
  0x23   :  { %392 = vsyncadd [#allocation3], 4294967168 }
  0x24   :  { %393 = dma.done.wait [#allocation6], 1536  }
  0x25   :  { %394 = vsyncadd [#allocation6], 4294965760  ;;  %v402_v0 = vmov 0.0   ;;  %vm403_vm0 = vmmov 0   ;;  %v64_v1 = vld [vmem:[#allocation5 + $0x18] sm:$0xff]  ;;  %v63_v2 = vld [vmem:[#allocation5 + $0x10] sm:$0xff] }
  0x26   :  { %271 = vmatprep.subr.mxu0 %v402_v0  ;;  %279 = vmatprep.mubr.msk.f32.mxu0 %vm403_vm0, %v402_v0  ;;  %v62_v3 = vld [vmem:[#allocation5 + $0x8] sm:$0xff]  ;;  %v61_v4 = vld [vmem:[#allocation5] sm:$0xff]  ;;  %v60_v5 = vld [vmem:[#allocation2] sm:$0xff]  ;;  %vm72_vm1 = vcmask 261120   ;;  %vm162_vm2 = vcmask 523264   ;;  %s404_s11 = smov [#allocation8]  }
  0x27   :  { %282 = vmatprep.subr.mxu1 %v402_v0  ;;  %298 = vmatprep.mubr.msk.f32.mxu1 %vm403_vm0, %v402_v0  ;;  %v154_v6 = vld [vmem:[#allocation7 + $0x38] sm:$0xff]  ;;  %v153_v7 = vld [vmem:[#allocation7 + $0x30] sm:$0xff]  ;;  %v152_v8 = vld [vmem:[#allocation7 + $0x28] sm:$0xff]  ;;  %s243_s12 = sshll.u32 %s404_s11, 4  ;;  %s244_s12 = int_to_ptr.vmem [resolvable:$true] %s243_s12 }
  0x28   :  { %272 = vmatpush3.msra.mxu0 %v64_v1  ;;  %283 = vmatpush3.msra.mxu1 %v154_v6  ;;  %v151_v9 = vld [vmem:[#allocation7 + $0x20] sm:$0xff]  ;;  %v150_v10 = vld [vmem:[#allocation7 + $0x18] sm:$0xff]  ;;  %v149_v11 = vld [vmem:[#allocation7 + $0x10] sm:$0xff]  ;;  %s371_s13 = scalar_lea.vmem %s244_s12, 128  ;;  %p376_p2 = scmp.lt.s32.totalorder %s244_s12, %s244_s12 }
  0x29   :  { %273 = vmatprep.subr.mxu0 %v402_v0  ;;  %284 = vmatprep.subr.mxu1 %v402_v0  ;;  %v148_v12 = vld [vmem:[#allocation7 + $0x8] sm:$0xff]  ;;  %v147_v13 = vld [vmem:[#allocation7] sm:$0xff]  ;;  %v253_v14 = vld [vmem:[%s455_s2] ss:$0 sm:$0xff]  ;;  %p372_p1 = scmp.ne.s32.totalorder %s244_s12, %s371_s13  ;;  %p377_p3 = scmp.lt.s32.totalorder %s371_s13, %s371_s13 }
  0x2a   :  { %274 = vmatpush3.msra.mxu0 %v63_v2  ;;  %285 = vmatpush3.msra.mxu1 %v153_v7  ;;  %v255_v19 = vld [vmem:[%s457_s4] ss:$0 sm:$0xff] }
  0x2b   :  { %275 = vmatprep.subr.mxu0 %v402_v0  ;;  %286 = vmatprep.subr.mxu1 %v402_v0  ;;  %p378_p4 = por %p377_p3, %p376_p2 }
  0x2c   :  { %276 = vmatpush3.msra.mxu0 %v62_v3  ;;  %287 = vmatpush3.msra.mxu1 %v152_v8 }
  0x2d   :  { %277 = vmatprep.subr.mxu0 %v402_v0  ;;  %288 = vmatprep.subr.mxu1 %v402_v0  ;;  %p379_p5 = pnand %p378_p4, %p372_p1 }
  0x2e   :  { %278 = vmatpush3.msra.mxu0 %v61_v4  ;;  %289 = vmatpush3.msra.mxu1 %v151_v9 }
  0x2f   :  { %280 = vmatmul.mubr.msk.f32.vlgmr.msra.gmra.mxu0 %vm72_vm1, %v60_v5  ;;  %290 = vmatprep.subr.mxu1 %v402_v0 }
  0x30   :  { %291 = vmatpush3.msra.mxu1 %v150_v10 }
  0x31   :  { %292 = vmatprep.subr.mxu1 %v402_v0 }
  0x32   :  { %293 = vmatpush3.msra.mxu1 %v149_v11 }
  0x33   :  { %294 = vmatprep.subr.mxu1 %v402_v0 }
  0x34   :  { %295 = vmatpush3.msra.mxu1 %v148_v12 }
  0x35   :  { %296 = vmatprep.subr.mxu1 %v402_v0 }
  0x36   :  { %297 = vmatpush3.msra.mxu1 %v147_v13 }
  0xef   :  { %v142_v15 = vpop.f32.mrf.mxu0 }
  0xf0   :  { %v143_v16 = vadd.f32 %v253_v14, %v142_v15 }
  0xf1   :  { %v281_v17 = vpop.f32.mrf.mxu0 }
  0xf2   :  { %309 = vtanh.f32 %v143_v16 }
  0xff   :  { %v310_v18 = vpop.eup %309 }
 0x100   :  { %299 = vmatmul.mubr.msk.f32.vlgmr.msra.gmra.mxu1 %vm162_vm2, %v310_v18 }
 0x1c0   :  { %v232_v20 = vpop.f32.mrf.mxu1 }
 0x1c1   :  { %v233_v21 = vadd.f32 %v255_v19, %v232_v20 }
 0x1c2   :  { %v300_v22 = vpop.f32.mrf.mxu1 }
 0x1c3   :  { %236 = vst [vmem:[#allocation8] sm:$0xff] %v233_v21 }
 0x1c4   :  { %382 = shalt.err (!%p379_p5)
}
 0x1c5   :  { %246 = dma.vmem_to_hbm [thread:$0]  %s244_s12, 128, %s458_s5, [#allocation4]  }
 0x1c6   :  { %395 = dma.done.wait [#allocation4], 128  }
 0x1c7   :  { %396 = vsyncadd [#allocation4], 4294967168 }
 0x1c8   :  { %250 = vsyncpa [#allocation3], 1 }
 0x1c9   :  { %251 = vsyncpa [#allocation6], 1 }
 0x1ca   :  { %252 = vsyncpa [#allocation4], 1 }

</bundles_post_ra>
